<compile_context>
chip_gen: v7x
topology: tpu7x:2x2x1
jax: 0.10.0
libtpu: 0.0.40
codegen_flags: <defaults>
</compile_context>

<pallas_src>
from typing import NamedTuple

import jax
import jax.numpy as jnp
from jax.experimental import pallas as pl
from jax.experimental.pallas import tpu as pltpu


def _round_up(n, m):
    return ((n + m - 1) // m) * m


def _cdiv(a, b):
    return (a + b - 1) // b


# -----------------------------------------------------------------------------
# Kernels
# -----------------------------------------------------------------------------
def _decoder_resident_kernel(x_ref, w3_ref, b3_ref, w4_ref, b4_ref, o_ref):
    """fc3 -> ReLU -> fc4 -> sigmoid with both weight matrices VMEM-resident."""
    # fc3: (TB, Hp) @ (Hp, Hp) -> f32 MXU accumulate; bias add + ReLU in f32.
    h = jnp.dot(x_ref[...], w3_ref[...], preferred_element_type=jnp.float32)
    h = jnp.maximum(h + b3_ref[...], 0.0)            # b3 is stored padded in f32
    # fc4: (TB, Hp) @ (Hp, Op) -> f32 accumulate; bias add in f32.
    y = jnp.dot(h.astype(w4_ref.dtype), w4_ref[...],
                preferred_element_type=jnp.float32)
    y = y + b4_ref[...]                               # b4 is stored padded in f32
    # sigmoid = 1/(1+exp(-y)): exp + reciprocal both use the EUP slot.
    o_ref[...] = pl.reciprocal(1.0 + jnp.exp(-y), approx=True).astype(o_ref.dtype)


def _decoder_ktiled_kernel(x_ref, w3_ref, b3_ref, w4_ref, b4_ref, o_ref, acc_ref):
    """Fallback: fc3 contraction tiled over K for large Hp (w3 streamed)."""
    k = pl.program_id(1)

    @pl.when(k == 0)
    def _():
        acc_ref[...] = jnp.zeros_like(acc_ref)

    acc_ref[...] += jnp.dot(x_ref[...], w3_ref[...],
                            preferred_element_type=jnp.float32)

    @pl.when(k == pl.num_programs(1) - 1)
    def _():
        h = jnp.maximum(acc_ref[...] + b3_ref[...], 0.0)
        y = jnp.dot(h.astype(w4_ref.dtype), w4_ref[...],
                    preferred_element_type=jnp.float32)
        y = y + b4_ref[...]
        o_ref[...] = pl.reciprocal(1.0 + jnp.exp(-y),
                                   approx=True).astype(o_ref.dtype)


# -----------------------------------------------------------------------------
# One-time parameter preparation (hoisted out of the per-step forward)
# -----------------------------------------------------------------------------
class DecoderParams(NamedTuple):
    w3p: jax.Array   # (Hp, Hp), padded, streaming dtype
    b3p: jax.Array   # (1, Hp),  padded, f32
    w4p: jax.Array   # (Hp, Op), padded, streaming dtype
    b4p: jax.Array   # (1, Op),  padded, f32
    H: int
    O: int


def prepare_decoder_params(w3, b3, w4, b4, *, param_dtype=None):
    """Pad features to multiples of 128 (lane-dense) and cast weights ONCE.

    Zero padding keeps semantics: padded hidden columns get bias 0 -> ReLU(0)=0
    and the matching padded w4 rows are zero, so they contribute nothing to fc4;
    padded output columns are sliced off by the forward wrapper.
    """
    H = w3.shape[0]
    O = w4.shape[1]
    Hp = _round_up(H, 128)
    Op = _round_up(O, 128)
    wdt = jnp.dtype(param_dtype) if param_dtype is not None else w3.dtype
    b3 = jnp.reshape(b3, (1, H)).astype(jnp.float32)
    b4 = jnp.reshape(b4, (1, O)).astype(jnp.float32)
    w3p = jnp.zeros((Hp, Hp), wdt).at[:H, :H].set(w3.astype(wdt))
    b3p = jnp.zeros((1, Hp), jnp.float32).at[:, :H].set(b3)
    w4p = jnp.zeros((Hp, Op), wdt).at[:H, :O].set(w4.astype(wdt))
    b4p = jnp.zeros((1, Op), jnp.float32).at[:, :O].set(b4)
    return DecoderParams(w3p, b3p, w4p, b4p, H, O)


def _tpu_generation_defaults():
    """Return (default batch tile, usable VMEM budget bytes, TCs per chip)."""
    kind = ""
    try:
        kind = jax.devices()[0].device_kind.lower()
    except Exception:
        pass
    if "v7" in kind:
        # 64 MiB VMEM per TC -> leave ~8 MiB headroom; 256 fills the MXU M dim.
        return 256, 56 * 1024 * 1024, 2
    if "v6" in kind:
        # 128 MiB VMEM, 2x256 MXU: big tile amortizes ~0.35us per-step overhead.
        return 512, 100 * 1024 * 1024, 1
    # v5e / unknown: 128 MiB VMEM, 128x128 MXU; tb=256 amortizes step overhead.
    # NOTE: the computed vmem_limit below intentionally exceeds v5e's 16 MiB
    # scoped default -- do not "fix" it back down.
    return 256, 100 * 1024 * 1024, 1


# -----------------------------------------------------------------------------
# Forward
# -----------------------------------------------------------------------------
def decoder_forward(x, params: DecoderParams, *, tb=None, tk=None,
                    force_k_tiled=False):
    """x: (B, H) -> sigmoid(relu(x @ w3 + b3) @ w4 + b4): (B, O)."""
    B, H = x.shape
    assert H == params.H, "hidden size mismatch"
    O = params.O
    Hp = params.w3p.shape[0]
    Op = params.w4p.shape[1]
    out_dtype = x.dtype
    stream_dtype = params.w3p.dtype

    tb_default, vmem_budget, n_cores = _tpu_generation_defaults()
    if tb is None:
        tb = tb_default
        # v7x megacore: ensure at least 2 batch tiles so both TCs get work.
        if n_cores > 1 and B >= 16:
            tb = min(tb, _round_up(_cdiv(B, n_cores), 8))
    tb = _round_up(max(8, min(tb, B)), 8)
    Bp = _round_up(B, tb)

    pbytes = jnp.dtype(stream_dtype).itemsize
    obytes = jnp.dtype(out_dtype).itemsize
    bias_bytes = (Hp + Op) * 4
    headroom = 8 * 1024 * 1024

    # Resident-path footprint: single-buffered weights + double-buffered tiles.
    resident_bytes = ((Hp * Hp + Hp * Op) * pbytes + bias_bytes
                      + 2 * tb * Hp * pbytes + 2 * tb * Op * obytes)
    use_k_tiled = force_k_tiled or (resident_bytes + headroom > vmem_budget)

    # Only pad / cast the activation when actually needed (extra HBM pass).
    needs_pad = (Bp != B) or (Hp != H)
    if needs_pad:
        xp = jnp.zeros((Bp, Hp), stream_dtype).at[:B, :H].set(
            x.astype(stream_dtype))
    elif x.dtype != stream_dtype:
        xp = x.astype(stream_dtype)
    else:
        xp = x

    def _spec(shape, index_map, single_buffer):
        # Constant-index (resident) operands: single buffer halves VMEM use.
        if single_buffer:
            return pl.BlockSpec(shape, index_map, pipeline_mode=pl.Buffered(1))
        return pl.BlockSpec(shape, index_map)

    if not use_k_tiled:
        vmem_limit = int(min(vmem_budget, resident_bytes + headroom))

        def run_resident(single_buffer):
            return pl.pallas_call(
                _decoder_resident_kernel,
                out_shape=jax.ShapeDtypeStruct((Bp, Op), out_dtype),
                grid=(Bp // tb,),
                in_specs=[
                    pl.BlockSpec((tb, Hp), lambda i: (i, 0)),   # x: streamed
                    _spec((Hp, Hp), lambda i: (0, 0), single_buffer),  # w3
                    _spec((1, Hp), lambda i: (0, 0), single_buffer),   # b3 (f32)
                    _spec((Hp, Op), lambda i: (0, 0), single_buffer),  # w4
                    _spec((1, Op), lambda i: (0, 0), single_buffer),   # b4 (f32)
                ],
                out_specs=pl.BlockSpec((tb, Op), lambda i: (i, 0)),
                compiler_params=pltpu.CompilerParams(
                    dimension_semantics=("parallel",),
                    vmem_limit_bytes=vmem_limit,
                ),
            )(xp, params.w3p, params.b3p, params.w4p, params.b4p)

        try:
            out = run_resident(True)
        except Exception:
            # Fallback for jax builds that reject Buffered(1) single-buffering.
            out = run_resident(False)
    else:
        if tk is None:
            tk = min(512, Hp)
            while Hp % tk:
                tk -= 128
        assert Hp % tk == 0
        ktiled_bytes = (2 * tk * Hp * pbytes + Hp * Op * pbytes + bias_bytes
                        + 2 * tb * tk * pbytes + 2 * tb * Op * obytes
                        + tb * Hp * 4)
        vmem_limit = int(min(vmem_budget, ktiled_bytes + headroom))

        def run_ktiled(single_buffer):
            return pl.pallas_call(
                _decoder_ktiled_kernel,
                out_shape=jax.ShapeDtypeStruct((Bp, Op), out_dtype),
                grid=(Bp // tb, Hp // tk),
                in_specs=[
                    pl.BlockSpec((tb, tk), lambda i, k: (i, k)),   # x tile
                    pl.BlockSpec((tk, Hp), lambda i, k: (k, 0)),   # w3 slab
                    _spec((1, Hp), lambda i, k: (0, 0), single_buffer),   # b3
                    _spec((Hp, Op), lambda i, k: (0, 0), single_buffer),  # w4
                    _spec((1, Op), lambda i, k: (0, 0), single_buffer),   # b4
                ],
                out_specs=pl.BlockSpec((tb, Op), lambda i, k: (i, 0)),
                scratch_shapes=[pltpu.VMEM((tb, Hp), jnp.float32)],
                compiler_params=pltpu.CompilerParams(
                    dimension_semantics=("parallel", "arbitrary"),
                    vmem_limit_bytes=vmem_limit,
                ),
            )(xp, params.w3p, params.b3p, params.w4p, params.b4p)

        try:
            out = run_ktiled(True)
        except Exception:
            out = run_ktiled(False)

    if Bp != B:
        out = out[:B]
    if Op != O:
        out = out[:, :O]
    return out


# -----------------------------------------------------------------------------
# Init / reference / tests
# -----------------------------------------------------------------------------
def init_decoder_params(key, hidden_size, output_size, dtype=jnp.float32):
    # Mimic nn.Linear default init: U(-1/sqrt(fan_in), 1/sqrt(fan_in)).
    # Weights stored pre-transposed (in, out) so the kernel computes x @ W.
    k3w, k3b, k4w, k4b = jax.random.split(key, 4)
    bound = 1.0 / (hidden_size ** 0.5)
    w3 = jax.random.uniform(k3w, (hidden_size, hidden_size), dtype,
                            minval=-bound, maxval=bound)
    b3 = jax.random.uniform(k3b, (1, hidden_size), dtype,
                            minval=-bound, maxval=bound)
    w4 = jax.random.uniform(k4w, (hidden_size, output_size), dtype,
                            minval=-bound, maxval=bound)
    b4 = jax.random.uniform(k4b, (1, output_size), dtype,
                            minval=-bound, maxval=bound)
    return w3, b3, w4, b4


def _reference(x, w3, b3, w4, b4):
    return jax.nn.sigmoid(jnp.maximum(x @ w3 + b3, 0.0) @ w4 + b4)


if __name__ == "__main__":
    key = jax.random.PRNGKey(0)
    kx1, kx2, kx3, kp, kp2 = jax.random.split(key, 5)

    hidden_size, output_size = 32, 16
    w3, b3, w4, b4 = init_decoder_params(kp, hidden_size, output_size)
    params_f32 = prepare_decoder_params(w3, b3, w4, b4)          # one-time pad
    params_bf16 = prepare_decoder_params(w3, b3, w4, b4,
                                         param_dtype=jnp.bfloat16)

    # Case 1: single grid step, resident-weight path.
    x1 = jax.random.normal(kx1, (8, hidden_size), jnp.float32)
    out1 = jax.block_until_ready(decoder_forward(x1, params_f32, tb=8))
    ref1 = _reference(x1, w3, b3, w4, b4)
    assert out1.shape == (8, output_size)
    assert jnp.allclose(out1, ref1, atol=2e-3, rtol=2e-3)

    # Case 2: batch not a multiple of the tile (padding + multi-step grid).
    x2 = jax.random.normal(kx2, (20, hidden_size), jnp.float32)
    out2 = jax.block_until_ready(decoder_forward(x2, params_f32, tb=8))
    ref2 = _reference(x2, w3, b3, w4, b4)
    assert out2.shape == (20, output_size)
    assert jnp.allclose(out2, ref2, atol=2e-3, rtol=2e-3)

    # Case 3: bf16-streamed weights/activations (f32 accumulate), looser tol.
    out3 = jax.block_until_ready(decoder_forward(x2, params_bf16, tb=8))
    assert out3.shape == (20, output_size)
    assert jnp.allclose(out3, ref2, atol=3e-2, rtol=3e-2)

    # Case 4: force the K-tiled fallback (2 k-steps) at a larger hidden size.
    hidden2, output2 = 160, 48
    w3b, b3b, w4b, b4b = init_decoder_params(kp2, hidden2, output2)
    params2 = prepare_decoder_params(w3b, b3b, w4b, b4b)
    x3 = jax.random.normal(kx3, (16, hidden2), jnp.float32)
    out4 = jax.block_until_ready(
        decoder_forward(x3, params2, tb=8, tk=128, force_k_tiled=True))
    ref4 = _reference(x3, w3b, b3b, w4b, b4b)
    assert out4.shape == (16, output2)
    assert jnp.allclose(out4, ref4, atol=2e-3, rtol=2e-3)

    print("KERNEL_OK")
</pallas_src>

<mosaic_0001>
module attributes {stable_mosaic.version = 11 : i64} {
  func.func @_decoder_resident_kernel(%arg0: i32, %arg1: memref<8x128xf32, #tpu.memory_space<vmem>>, %arg2: memref<128x128xf32, #tpu.memory_space<vmem>>, %arg3: memref<1x128xf32, #tpu.memory_space<vmem>>, %arg4: memref<128x128xf32, #tpu.memory_space<vmem>>, %arg5: memref<1x128xf32, #tpu.memory_space<vmem>>, %arg6: memref<8x128xf32, #tpu.memory_space<vmem>>) attributes {dimension_semantics = [#tpu.dimension_semantics<parallel>], iteration_bounds = array<i64: 1>, scalar_prefetch = 0 : i64, scratch_operands = 0 : i64, tpu.core_type = #tpu.core_type<tc>, window_params = [{transform_indices = @transform_0, window_bounds = array<i64: 8, 128>}, {pipeline_mode = #tpu.pipeline_mode<synchronous>, transform_indices = @transform_1, window_bounds = array<i64: 128, 128>}, {pipeline_mode = #tpu.pipeline_mode<synchronous>, transform_indices = @transform_2, window_bounds = array<i64: 1, 128>}, {pipeline_mode = #tpu.pipeline_mode<synchronous>, transform_indices = @transform_3, window_bounds = array<i64: 128, 128>}, {pipeline_mode = #tpu.pipeline_mode<synchronous>, transform_indices = @transform_4, window_bounds = array<i64: 1, 128>}, {transform_indices = @transform_5, window_bounds = array<i64: 8, 128>}]} {
    %c0 = arith.constant 0 : index
    %c0_0 = arith.constant 0 : index
    %0 = vector.load %arg1[%c0, %c0_0] : memref<8x128xf32, #tpu.memory_space<vmem>>, vector<8x128xf32>
    %c0_1 = arith.constant 0 : index
    %c0_2 = arith.constant 0 : index
    %1 = vector.load %arg2[%c0_1, %c0_2] : memref<128x128xf32, #tpu.memory_space<vmem>>, vector<128x128xf32>
    %cst = arith.constant dense<0.000000e+00> : vector<8x128xf32>
    %2 = tpu.matmul %0, %1, %cst {dimension_numbers = #tpu.dot_dimension_numbers<[1], [0], [0], [1], [0, 0, 1, 1], [], []>} : vector<8x128xf32>, vector<128x128xf32>, vector<8x128xf32> -> vector<8x128xf32>
    %c0_3 = arith.constant 0 : index
    %c0_4 = arith.constant 0 : index
    %3 = vector.load %arg3[%c0_3, %c0_4] : memref<1x128xf32, #tpu.memory_space<vmem>>, vector<1x128xf32>
    %4 = vector.broadcast %3 : vector<1x128xf32> to vector<8x128xf32>
    %5 = arith.addf %2, %4 : vector<8x128xf32>
    %cst_5 = arith.constant 0.000000e+00 : f32
    %6 = vector.broadcast %cst_5 : f32 to vector<8x128xf32>
    %7 = arith.maximumf %5, %6 : vector<8x128xf32>
    %c0_6 = arith.constant 0 : index
    %c0_7 = arith.constant 0 : index
    %8 = vector.load %arg4[%c0_6, %c0_7] : memref<128x128xf32, #tpu.memory_space<vmem>>, vector<128x128xf32>
    %cst_8 = arith.constant dense<0.000000e+00> : vector<8x128xf32>
    %9 = tpu.matmul %7, %8, %cst_8 {dimension_numbers = #tpu.dot_dimension_numbers<[1], [0], [0], [1], [0, 0, 1, 1], [], []>} : vector<8x128xf32>, vector<128x128xf32>, vector<8x128xf32> -> vector<8x128xf32>
    %c0_9 = arith.constant 0 : index
    %c0_10 = arith.constant 0 : index
    %10 = vector.load %arg5[%c0_9, %c0_10] : memref<1x128xf32, #tpu.memory_space<vmem>>, vector<1x128xf32>
    %11 = vector.broadcast %10 : vector<1x128xf32> to vector<8x128xf32>
    %12 = arith.addf %9, %11 : vector<8x128xf32>
    %cst_11 = arith.constant 0.000000e+00 : f32
    %13 = vector.broadcast %cst_11 : f32 to vector<8x128xf32>
    %14 = arith.subf %13, %12 : vector<8x128xf32>
    %15 = math.exp %14 : vector<8x128xf32>
    %cst_12 = arith.constant 1.000000e+00 : f32
    %16 = vector.broadcast %cst_12 : f32 to vector<8x128xf32>
    %17 = arith.addf %16, %15 : vector<8x128xf32>
    %18 = tpu.reciprocal %17 {approx = true} : vector<8x128xf32> -> vector<8x128xf32>
    %c0_13 = arith.constant 0 : index
    %c0_14 = arith.constant 0 : index
    %19 = vector.load %arg6[%c0_13, %c0_14] : memref<8x128xf32, #tpu.memory_space<vmem>>, vector<8x128xf32>
    tpu.vector_store %arg6[%c0_13, %c0_14], %18 {strides = array<i32>} : memref<8x128xf32, #tpu.memory_space<vmem>>, vector<8x128xf32>,
    return
  }
  func.func @transform_0(%arg0: i32) -> (i32, i32) {
    %c0_i32 = arith.constant 0 : i32
    %c0_i32_0 = arith.constant 0 : i32
    return %arg0, %c0_i32 : i32, i32
  }
  func.func @transform_1(%arg0: i32) -> (i32, i32) {
    %c0_i32 = arith.constant 0 : i32
    %c0_i32_0 = arith.constant 0 : i32
    %c0_i32_1 = arith.constant 0 : i32
    return %c0_i32, %c0_i32_0 : i32, i32
  }
  func.func @transform_2(%arg0: i32) -> (i32, i32) {
    %c0_i32 = arith.constant 0 : i32
    %c0_i32_0 = arith.constant 0 : i32
    %c0_i32_1 = arith.constant 0 : i32
    return %c0_i32, %c0_i32_0 : i32, i32
  }
  func.func @transform_3(%arg0: i32) -> (i32, i32) {
    %c0_i32 = arith.constant 0 : i32
    %c0_i32_0 = arith.constant 0 : i32
    %c0_i32_1 = arith.constant 0 : i32
    return %c0_i32, %c0_i32_0 : i32, i32
  }
  func.func @transform_4(%arg0: i32) -> (i32, i32) {
    %c0_i32 = arith.constant 0 : i32
    %c0_i32_0 = arith.constant 0 : i32
    %c0_i32_1 = arith.constant 0 : i32
    return %c0_i32, %c0_i32_0 : i32, i32
  }
  func.func @transform_5(%arg0: i32) -> (i32, i32) {
    %c0_i32 = arith.constant 0 : i32
    %c0_i32_0 = arith.constant 0 : i32
    return %arg0, %c0_i32 : i32, i32
  }
}

module attributes {stable_mosaic.version = 11 : i64} {
  func.func @_decoder_resident_kernel(%arg0: i32, %arg1: memref<8x128xf32, #tpu.memory_space<vmem>>, %arg2: memref<128x128xf32, #tpu.memory_space<vmem>>, %arg3: memref<1x128xf32, #tpu.memory_space<vmem>>, %arg4: memref<128x128xf32, #tpu.memory_space<vmem>>, %arg5: memref<1x128xf32, #tpu.memory_space<vmem>>, %arg6: memref<8x128xf32, #tpu.memory_space<vmem>>) attributes {dimension_semantics = [#tpu.dimension_semantics<parallel>], iteration_bounds = array<i64: 1>, scalar_prefetch = 0 : i64, scratch_operands = 0 : i64, tpu.core_type = #tpu.core_type<tc>, window_params = [{transform_indices = @transform_0, window_bounds = array<i64: 8, 128>}, {pipeline_mode = #tpu.pipeline_mode<synchronous>, transform_indices = @transform_1, window_bounds = array<i64: 128, 128>}, {pipeline_mode = #tpu.pipeline_mode<synchronous>, transform_indices = @transform_2, window_bounds = array<i64: 1, 128>}, {pipeline_mode = #tpu.pipeline_mode<synchronous>, transform_indices = @transform_3, window_bounds = array<i64: 128, 128>}, {pipeline_mode = #tpu.pipeline_mode<synchronous>, transform_indices = @transform_4, window_bounds = array<i64: 1, 128>}, {transform_indices = @transform_5, window_bounds = array<i64: 8, 128>}]} {
    %c0 = arith.constant 0 : index
    %c0_0 = arith.constant 0 : index
    %0 = vector.load %arg1[%c0, %c0_0] : memref<8x128xf32, #tpu.memory_space<vmem>>, vector<8x128xf32>
    %c0_1 = arith.constant 0 : index
    %c0_2 = arith.constant 0 : index
    %1 = vector.load %arg2[%c0_1, %c0_2] : memref<128x128xf32, #tpu.memory_space<vmem>>, vector<128x128xf32>
    %cst = arith.constant dense<0.000000e+00> : vector<8x128xf32>
    %2 = tpu.matmul %0, %1, %cst {dimension_numbers = #tpu.dot_dimension_numbers<[1], [0], [0], [1], [0, 0, 1, 1], [], []>} : vector<8x128xf32>, vector<128x128xf32>, vector<8x128xf32> -> vector<8x128xf32>
    %c0_3 = arith.constant 0 : index
    %c0_4 = arith.constant 0 : index
    %3 = vector.load %arg3[%c0_3, %c0_4] : memref<1x128xf32, #tpu.memory_space<vmem>>, vector<1x128xf32>
    %4 = vector.broadcast %3 : vector<1x128xf32> to vector<8x128xf32>
    %5 = arith.addf %2, %4 : vector<8x128xf32>
    %cst_5 = arith.constant 0.000000e+00 : f32
    %6 = vector.broadcast %cst_5 : f32 to vector<8x128xf32>
    %7 = arith.maximumf %5, %6 : vector<8x128xf32>
    %c0_6 = arith.constant 0 : index
    %c0_7 = arith.constant 0 : index
    %8 = vector.load %arg4[%c0_6, %c0_7] : memref<128x128xf32, #tpu.memory_space<vmem>>, vector<128x128xf32>
    %cst_8 = arith.constant dense<0.000000e+00> : vector<8x128xf32>
    %9 = tpu.matmul %7, %8, %cst_8 {dimension_numbers = #tpu.dot_dimension_numbers<[1], [0], [0], [1], [0, 0, 1, 1], [], []>} : vector<8x128xf32>, vector<128x128xf32>, vector<8x128xf32> -> vector<8x128xf32>
    %c0_9 = arith.constant 0 : index
    %c0_10 = arith.constant 0 : index
    %10 = vector.load %arg5[%c0_9, %c0_10] : memref<1x128xf32, #tpu.memory_space<vmem>>, vector<1x128xf32>
    %11 = vector.broadcast %10 : vector<1x128xf32> to vector<8x128xf32>
    %12 = arith.addf %9, %11 : vector<8x128xf32>
    %cst_11 = arith.constant 0.000000e+00 : f32
    %13 = vector.broadcast %cst_11 : f32 to vector<8x128xf32>
    %14 = arith.subf %13, %12 : vector<8x128xf32>
    %15 = math.exp %14 : vector<8x128xf32>
    %cst_12 = arith.constant 1.000000e+00 : f32
    %16 = vector.broadcast %cst_12 : f32 to vector<8x128xf32>
    %17 = arith.addf %16, %15 : vector<8x128xf32>
    %18 = tpu.reciprocal %17 {approx = true} : vector<8x128xf32> -> vector<8x128xf32>
    %c0_13 = arith.constant 0 : index
    %c0_14 = arith.constant 0 : index
    %19 = vector.load %arg6[%c0_13, %c0_14] : memref<8x128xf32, #tpu.memory_space<vmem>>, vector<8x128xf32>
    tpu.vector_store %arg6[%c0_13, %c0_14], %18 {strides = array<i32>} : memref<8x128xf32, #tpu.memory_space<vmem>>, vector<8x128xf32>,
    return
  }
  func.func @transform_0(%arg0: i32) -> (i32, i32) {
    %c0_i32 = arith.constant 0 : i32
    %c0_i32_0 = arith.constant 0 : i32
    return %arg0, %c0_i32 : i32, i32
  }
  func.func @transform_1(%arg0: i32) -> (i32, i32) {
    %c0_i32 = arith.constant 0 : i32
    %c0_i32_0 = arith.constant 0 : i32
    %c0_i32_1 = arith.constant 0 : i32
    return %c0_i32, %c0_i32_0 : i32, i32
  }
  func.func @transform_2(%arg0: i32) -> (i32, i32) {
    %c0_i32 = arith.constant 0 : i32
    %c0_i32_0 = arith.constant 0 : i32
    %c0_i32_1 = arith.constant 0 : i32
    return %c0_i32, %c0_i32_0 : i32, i32
  }
  func.func @transform_3(%arg0: i32) -> (i32, i32) {
    %c0_i32 = arith.constant 0 : i32
    %c0_i32_0 = arith.constant 0 : i32
    %c0_i32_1 = arith.constant 0 : i32
    return %c0_i32, %c0_i32_0 : i32, i32
  }
  func.func @transform_4(%arg0: i32) -> (i32, i32) {
    %c0_i32 = arith.constant 0 : i32
    %c0_i32_0 = arith.constant 0 : i32
    %c0_i32_1 = arith.constant 0 : i32
    return %c0_i32, %c0_i32_0 : i32, i32
  }
  func.func @transform_5(%arg0: i32) -> (i32, i32) {
    %c0_i32 = arith.constant 0 : i32
    %c0_i32_0 = arith.constant 0 : i32
    return %arg0, %c0_i32 : i32, i32
  }
}

</mosaic_0001>

<bundles_post_ra>
// kernel: tpu_custom_call.1
= control target key start
LH: loop header
LB: loop body
LE: loop exit
PB: predicated region body
PF: predicated region fallthrough
CT: control target
= control target key end

     0   :  { %10 = vsyncpa [#allocation3], 0  ;;  %s646_s0 = inlined_call_operand.hbm [shape: f32[8,128], index: 0, kind: input, shape index: {}]   ;;  %s647_s1 = inlined_call_operand.hbm [shape: f32[128,128], index: 1, kind: input, shape index: {}]   ;;  %s648_s2 = inlined_call_operand.vmem [shape: f32[1,128], index: 2, kind: input, shape index: {}]   ;;  %s649_s3 = inlined_call_operand.hbm [shape: f32[128,128], index: 3, kind: input, shape index: {}]   ;;  %s650_s4 = inlined_call_operand.vmem [shape: f32[1,128], index: 4, kind: input, shape index: {}]   ;;  %s651_s5 = inlined_call_operand.hbm [shape: f32[8,128], index: 5, kind: output, shape index: {}]  }
   0x1   :  { %11 = vsyncpa [#allocation6], 0 }
   0x2   :  { %12 = vsyncpa [#allocation4], 0  ;;  %s531_s18 = smov [#allocation5]   ;;  %s437_s22 = scalar_lea.hbm %s647_s1, 2048 }
   0x3   :  { %s28_s19 = sshll.u32 %s531_s18, 4  ;;  %p438_p0 = scmp.ne.s32.totalorder %s647_s1, %s437_s22  ;;  %s29_s19 = int_to_ptr.vmem [resolvable:$true] %s28_s19 }
   0x4   :  { %p441_p1 = scmp.lt.u32.totalorder %s437_s22, %s647_s1 }
   0x6   :  { %p443_p2 = pnand %p441_p1, %p438_p0 }
   0x8   :  { %446 = shalt.err (!%p443_p2)
}
   0x9   :  { %s447_s27 = scalar_lea.vmem %s29_s19, 2048  ;;  %p452_p4 = scmp.lt.s32.totalorder %s29_s19, %s29_s19 }
   0xa   :  { %p448_p3 = scmp.ne.s32.totalorder %s29_s19, %s447_s27  ;;  %p453_p5 = scmp.lt.s32.totalorder %s447_s27, %s447_s27 }
   0xc   :  { %p454_p6 = por %p453_p5, %p452_p4 }
   0xe   :  { %p455_p7 = pnand %p454_p6, %p448_p3 }
  0x10   :  { %458 = shalt.err (!%p455_p7)
}
  0x11   :  { %s532_s28 = smov 128   ;;  %s533_s29 = smov 8  }
  0x12   :  { %34 = dma.hbm_to_vmem [thread:$0]  %s647_s1, 2048, %s29_s19, [#allocation6], %s532_s28, %s532_s28, %s533_s29  }
  0x13   :  { %s534_s7 = smov [#allocation2]   ;;  %s535_s9 = smov [#allocation7]  }
  0x14   :  { %s19_s8 = sshll.u32 %s534_s7, 4  ;;  %s42_s10 = sshll.u32 %s535_s9, 4  ;;  %s20_s8 = int_to_ptr.vmem [resolvable:$true] %s19_s8  ;;  %s43_s10 = int_to_ptr.vmem [resolvable:$true] %s42_s10 }
  0x15   :  { %s459_s13 = scalar_lea.hbm %s646_s0, 128 }
  0x16   :  { %p460_p8 = scmp.ne.s32.totalorder %s646_s0, %s459_s13  ;;  %p463_p9 = scmp.lt.u32.totalorder %s459_s13, %s646_s0 }
  0x18   :  { %p465_p10 = pnand %p463_p9, %p460_p8 }
  0x1a   :  { %468 = shalt.err (!%p465_p10)
}
  0x1b   :  { %s469_s1 = scalar_lea.vmem %s20_s8, 128  ;;  %p474_p12 = scmp.lt.s32.totalorder %s20_s8, %s20_s8 }
  0x1c   :  { %p470_p11 = scmp.ne.s32.totalorder %s20_s8, %s469_s1  ;;  %p475_p13 = scmp.lt.s32.totalorder %s469_s1, %s469_s1 }
  0x1e   :  { %p476_p0 = por %p475_p13, %p474_p12 }
  0x20   :  { %p477_p1 = pnand %p476_p0, %p470_p11 }
  0x22   :  { %480 = shalt.err (!%p477_p1)
}
  0x23   :  { %22 = dma.hbm_to_vmem [thread:$0]  %s646_s0, 128, %s20_s8, [#allocation3]  }
  0x24   :  { %s481_s22 = scalar_lea.hbm %s649_s3, 2048 }
  0x25   :  { %p482_p2 = scmp.ne.s32.totalorder %s649_s3, %s481_s22  ;;  %p485_p3 = scmp.lt.u32.totalorder %s481_s22, %s649_s3 }
  0x27   :  { %p487_p4 = pnand %p485_p3, %p482_p2 }
  0x29   :  { %490 = shalt.err (!%p487_p4)
}
  0x2a   :  { %s491_s27 = scalar_lea.vmem %s43_s10, 2048  ;;  %p496_p6 = scmp.lt.s32.totalorder %s43_s10, %s43_s10 }
  0x2b   :  { %p492_p5 = scmp.ne.s32.totalorder %s43_s10, %s491_s27  ;;  %p497_p7 = scmp.lt.s32.totalorder %s491_s27, %s491_s27 }
  0x2d   :  { %p498_p8 = por %p497_p7, %p496_p6 }
  0x2f   :  { %p499_p9 = pnand %p498_p8, %p492_p5 }
  0x31   :  { %502 = shalt.err (!%p499_p9)
}
  0x32   :  { %48 = dma.hbm_to_vmem [thread:$0]  %s649_s3, 2048, %s43_s10, [#allocation6], %s532_s28, %s532_s28, %s533_s29  }
  0x33   :  { %525 = dma.done.wait [#allocation3], 128  }
  0x34   :  { %526 = vsyncadd [#allocation3], 4294967168 }
  0x35   :  { %527 = dma.done.wait [#allocation6], 4096  }
  0x36   :  { %528 = vsyncadd [#allocation6], 4294963200  ;;  %v536_v0 = vmov 0.0|0.0   ;;  %vm537_vm0 = vmmov 0   ;;  %v538_v1 = vmov 0.0   ;;  %v61_v2 = vld [vmem:[#allocation5] sm:$0xff] }
  0x37   :  { %376 = vmatprep.subr.bf16.mxu0 %v536_v0  ;;  %338 = vmatprep.mubr.msk.f32.mxu0 %vm537_vm0, %v538_v1  ;;  %v62_v3 = vld [vmem:[#allocation5 + $0x8] sm:$0xff]  ;;  %v63_v4 = vld [vmem:[#allocation5 + $0x10] sm:$0xff]  ;;  %v64_v6 = vld [vmem:[#allocation5 + $0x18] sm:$0xff]  ;;  %s539_s7 = smov [#allocation8]  }
  0x38   :  { %400 = vmatprep.subr.bf16.mxu1 %v536_v0  ;;  %373 = vmatprep.mubr.msk.f32.mxu1 %vm537_vm0, %v538_v1  ;;  %v377_v5 = vpack.c.bf16 %v62_v3, %v61_v2  ;;  %v380_v7 = vpack.c.bf16 %v64_v6, %v63_v4  ;;  %v65_v8 = vld [vmem:[#allocation5 + $0x20] sm:$0xff]  ;;  %v66_v9 = vld [vmem:[#allocation5 + $0x28] sm:$0xff]  ;;  %v157_v12 = vld [vmem:[#allocation7 + $0x10] sm:$0xff] }
  0x39   :  { %v155_v10 = vld [vmem:[#allocation7] sm:$0xff]  ;;  %v156_v11 = vld [vmem:[#allocation7 + $0x8] sm:$0xff]  ;;  %v158_v13 = vld [vmem:[#allocation7 + $0x18] sm:$0xff]  ;;  %v383_v14 = vpack.c.bf16 %v66_v9, %v65_v8 }
  0x3a   :  { %378 = vmatpush3.bf16.msra.mxu0 %v377_v5  ;;  %v401_v15 = vpack.c.bf16 %v156_v11, %v155_v10  ;;  %v67_v16 = vld [vmem:[#allocation5 + $0x30] sm:$0xff]  ;;  %v68_v17 = vld [vmem:[#allocation5 + $0x38] sm:$0xff]  ;;  %v404_v18 = vpack.c.bf16 %v158_v13, %v157_v12  ;;  %v159_v19 = vld [vmem:[#allocation7 + $0x20] sm:$0xff] }
  0x3b   :  { %379 = vmatprep.subr.bf16.mxu0 %v536_v0  ;;  %v160_v20 = vld [vmem:[#allocation7 + $0x28] sm:$0xff]  ;;  %v386_v21 = vpack.c.bf16 %v68_v17, %v67_v16  ;;  %v69_v22 = vld [vmem:[#allocation5 + $0x40] sm:$0xff]  ;;  %v161_v25 = vld [vmem:[#allocation7 + $0x30] sm:$0xff] }
  0x3c   :  { %402 = vmatpush3.bf16.msra.mxu1 %v401_v15  ;;  %v70_v23 = vld [vmem:[#allocation5 + $0x48] sm:$0xff]  ;;  %v407_v24 = vpack.c.bf16 %v160_v20, %v159_v19  ;;  %v162_v26 = vld [vmem:[#allocation7 + $0x38] sm:$0xff]  ;;  %v71_v28 = vld [vmem:[#allocation5 + $0x50] sm:$0xff] }
  0x3d   :  { %403 = vmatprep.subr.bf16.mxu1 %v536_v0  ;;  %v389_v27 = vpack.c.bf16 %v70_v23, %v69_v22  ;;  %v72_v29 = vld [vmem:[#allocation5 + $0x58] sm:$0xff]  ;;  %v410_v30 = vpack.c.bf16 %v162_v26, %v161_v25  ;;  %v163_v31 = vld [vmem:[#allocation7 + $0x40] sm:$0xff]  ;;  %v164_v32 = vld [vmem:[#allocation7 + $0x48] sm:$0xff] }
  0x3e   :  { %381 = vmatpush3.bf16.msra.mxu0 %v380_v7  ;;  %v392_v33 = vpack.c.bf16 %v72_v29, %v71_v28  ;;  %v73_v34 = vld [vmem:[#allocation5 + $0x60] sm:$0xff]  ;;  %v74_v35 = vld [vmem:[#allocation5 + $0x68] sm:$0xff]  ;;  %v413_v36 = vpack.c.bf16 %v164_v32, %v163_v31  ;;  %v165_v37 = vld [vmem:[#allocation7 + $0x50] sm:$0xff] }
  0x3f   :  { %382 = vmatprep.subr.bf16.mxu0 %v536_v0  ;;  %v166_v38 = vld [vmem:[#allocation7 + $0x58] sm:$0xff]  ;;  %v395_v39 = vpack.c.bf16 %v74_v35, %v73_v34  ;;  %v75_v40 = vld [vmem:[#allocation5 + $0x70] sm:$0xff]  ;;  %v167_v43 = vld [vmem:[#allocation7 + $0x60] sm:$0xff] }
  0x40   :  { %405 = vmatpush3.bf16.msra.mxu1 %v404_v18  ;;  %v76_v41 = vld [vmem:[#allocation5 + $0x78] sm:$0xff]  ;;  %v416_v42 = vpack.c.bf16 %v166_v38, %v165_v37  ;;  %v168_v44 = vld [vmem:[#allocation7 + $0x68] sm:$0xff]  ;;  %v169_v48 = vld [vmem:[#allocation7 + $0x70] sm:$0xff] }
  0x41   :  { %406 = vmatprep.subr.bf16.mxu1 %v536_v0  ;;  %v398_v45 = vpack.c.bf16 %v76_v41, %v75_v40  ;;  %v419_v46 = vpack.c.bf16 %v168_v44, %v167_v43  ;;  %v60_v47 = vld [vmem:[#allocation2] sm:$0xff] }
  0x42   :  { %384 = vmatpush3.bf16.msra.mxu0 %v383_v14  ;;  %v170_v49 = vld [vmem:[#allocation7 + $0x78] sm:$0xff] }
  0x43   :  { %385 = vmatprep.subr.bf16.mxu0 %v536_v0  ;;  %v422_v50 = vpack.c.bf16 %v170_v49, %v169_v48  ;;  %v270_v51 = vld [vmem:[%s648_s2] ss:$0 sm:$0xff]  ;;  %s260_s2 = sshll.u32 %s539_s7, 4  ;;  %s261_s2 = int_to_ptr.vmem [resolvable:$true] %s260_s2 }
  0x44   :  { %408 = vmatpush3.bf16.msra.mxu1 %v407_v24  ;;  %v271_v56 = vld [vmem:[%s650_s4] ss:$0 sm:$0xff]  ;;  %s503_s8 = scalar_lea.vmem %s261_s2, 128  ;;  %p508_p11 = scmp.lt.s32.totalorder %s261_s2, %s261_s2 }
  0x45   :  { %409 = vmatprep.subr.bf16.mxu1 %v536_v0  ;;  %p504_p10 = scmp.ne.s32.totalorder %s261_s2, %s503_s8  ;;  %p509_p12 = scmp.lt.s32.totalorder %s503_s8, %s503_s8 }
  0x46   :  { %387 = vmatpush3.bf16.msra.mxu0 %v386_v21 }
  0x47   :  { %388 = vmatprep.subr.bf16.mxu0 %v536_v0  ;;  %p510_p13 = por %p509_p12, %p508_p11 }
  0x48   :  { %411 = vmatpush3.bf16.msra.mxu1 %v410_v30 }
  0x49   :  { %412 = vmatprep.subr.bf16.mxu1 %v536_v0  ;;  %p511_p0 = pnand %p510_p13, %p504_p10 }
  0x4a   :  { %390 = vmatpush3.bf16.msra.mxu0 %v389_v27 }
  0x4b   :  { %391 = vmatprep.subr.bf16.mxu0 %v536_v0 }
  0x4c   :  { %414 = vmatpush3.bf16.msra.mxu1 %v413_v36 }
  0x4d   :  { %415 = vmatprep.subr.bf16.mxu1 %v536_v0 }
  0x4e   :  { %393 = vmatpush3.bf16.msra.mxu0 %v392_v33 }
  0x4f   :  { %394 = vmatprep.subr.bf16.mxu0 %v536_v0 }
  0x50   :  { %417 = vmatpush3.bf16.msra.mxu1 %v416_v42 }
  0x51   :  { %418 = vmatprep.subr.bf16.mxu1 %v536_v0 }
  0x52   :  { %396 = vmatpush3.bf16.msra.mxu0 %v395_v39 }
  0x53   :  { %397 = vmatprep.subr.bf16.mxu0 %v536_v0 }
  0x54   :  { %420 = vmatpush3.bf16.msra.mxu1 %v419_v46 }
  0x55   :  { %421 = vmatprep.subr.bf16.mxu1 %v536_v0 }
  0x56   :  { %399 = vmatpush3.bf16.msra.mxu0 %v398_v45 }
  0x58   :  { %423 = vmatpush3.bf16.msra.mxu1 %v422_v50 }
  0x59   :  { %339 = vmatmul.mubr.f32.vlgmr.msra.gmra.mrb[0].mxu0 %v60_v47 }
 0x12c   :  { %v150_v52 = vpop.f32.mrb[0].mxu0 }
 0x12d   :  { %v151_v53 = vadd.f32 %v270_v51, %v150_v52  ;;  %v340_v54 = vpop.f32.mrb[1].mxu0 }
 0x12f   :  { %v154_v55 = vmax.f32 %v151_v53, 0.0 }
 0x131   :  { %374 = vmatmul.mubr.f32.vlgmr.msra.gmra.mrb[0].mxu1 %v154_v55 }
 0x204   :  { %v244_v57 = vpop.f32.mrb[0].mxu1 }
 0x205   :  { %v245_v58 = vadd.f32 %v271_v56, %v244_v57  ;;  %v375_v59 = vpop.f32.mrb[1].mxu1 }
 0x207   :  { %v248_v60 = vsub.f32 0.0, %v245_v58 }
 0x209   :  { %v249_v61 = vmul.f32 1.442695, %v248_v60 }
 0x20b   :  { %433 = vpow2.f32 %v249_v61 }
 0x215   :  { %v434_v62 = vpop.eup %433 }
 0x216   :  { %v251_v63 = vadd.f32 1.0, %v434_v62 }
 0x218   :  { %435 = vrcp.f32 %v251_v63 }
 0x222   :  { %v436_v0 = vpop.eup %435 }
 0x223   :  { %253 = vst [vmem:[#allocation8] sm:$0xff] %v436_v0 }
 0x224   :  { %514 = shalt.err (!%p511_p0)
}
 0x225   :  { %s515_s10 = scalar_lea.hbm %s651_s5, 128 }
 0x226   :  { %p516_p1 = scmp.ne.s32.totalorder %s651_s5, %s515_s10  ;;  %p519_p2 = scmp.lt.u32.totalorder %s515_s10, %s651_s5 }
 0x228   :  { %p521_p3 = pnand %p519_p2, %p516_p1 }
 0x22a   :  { %524 = shalt.err (!%p521_p3)
}
 0x22b   :  { %263 = dma.vmem_to_hbm [thread:$0]  %s261_s2, 128, %s651_s5, [#allocation4]  }
 0x22c   :  { %529 = dma.done.wait [#allocation4], 128  }
 0x22d   :  { %530 = vsyncadd [#allocation4], 4294967168 }
 0x22e   :  { %267 = vsyncpa [#allocation3], 1 }
 0x22f   :  { %268 = vsyncpa [#allocation6], 1 }
 0x230   :  { %269 = vsyncpa [#allocation4], 1 }

// kernel: tpu_custom_call.1
= control target key start
LH: loop header
LB: loop body
LE: loop exit
PB: predicated region body
PF: predicated region fallthrough
CT: control target
= control target key end

     0   :  { %10 = vsyncpa [#allocation3], 0  ;;  %s646_s0 = inlined_call_operand.hbm [shape: f32[8,128], index: 0, kind: input, shape index: {}]   ;;  %s647_s1 = inlined_call_operand.hbm [shape: f32[128,128], index: 1, kind: input, shape index: {}]   ;;  %s648_s2 = inlined_call_operand.vmem [shape: f32[1,128], index: 2, kind: input, shape index: {}]   ;;  %s649_s3 = inlined_call_operand.hbm [shape: f32[128,128], index: 3, kind: input, shape index: {}]   ;;  %s650_s4 = inlined_call_operand.vmem [shape: f32[1,128], index: 4, kind: input, shape index: {}]   ;;  %s651_s5 = inlined_call_operand.hbm [shape: f32[8,128], index: 5, kind: output, shape index: {}]  }
   0x1   :  { %11 = vsyncpa [#allocation6], 0 }
   0x2   :  { %12 = vsyncpa [#allocation4], 0  ;;  %s531_s18 = smov [#allocation5]   ;;  %s437_s22 = scalar_lea.hbm %s647_s1, 2048 }
   0x3   :  { %s28_s19 = sshll.u32 %s531_s18, 4  ;;  %p438_p0 = scmp.ne.s32.totalorder %s647_s1, %s437_s22  ;;  %s29_s19 = int_to_ptr.vmem [resolvable:$true] %s28_s19 }
   0x4   :  { %p441_p1 = scmp.lt.u32.totalorder %s437_s22, %s647_s1 }
   0x6   :  { %p443_p2 = pnand %p441_p1, %p438_p0 }
   0x8   :  { %446 = shalt.err (!%p443_p2)
}
   0x9   :  { %s447_s27 = scalar_lea.vmem %s29_s19, 2048  ;;  %p452_p4 = scmp.lt.s32.totalorder %s29_s19, %s29_s19 }
   0xa   :  { %p448_p3 = scmp.ne.s32.totalorder %s29_s19, %s447_s27  ;;  %p453_p5 = scmp.lt.s32.totalorder %s447_s27, %s447_s27 }
   0xc   :  { %p454_p6 = por %p453_p5, %p452_p4 }
   0xe   :  { %p455_p7 = pnand %p454_p6, %p448_p3 }
  0x10   :  { %458 = shalt.err (!%p455_p7)
}
  0x11   :  { %s532_s28 = smov 128   ;;  %s533_s29 = smov 8  }
  0x12   :  { %34 = dma.hbm_to_vmem [thread:$0]  %s647_s1, 2048, %s29_s19, [#allocation6], %s532_s28, %s532_s28, %s533_s29  }
  0x13   :  { %s534_s7 = smov [#allocation2]   ;;  %s535_s9 = smov [#allocation7]  }
  0x14   :  { %s19_s8 = sshll.u32 %s534_s7, 4  ;;  %s42_s10 = sshll.u32 %s535_s9, 4  ;;  %s20_s8 = int_to_ptr.vmem [resolvable:$true] %s19_s8  ;;  %s43_s10 = int_to_ptr.vmem [resolvable:$true] %s42_s10 }
  0x15   :  { %s459_s13 = scalar_lea.hbm %s646_s0, 128 }
  0x16   :  { %p460_p8 = scmp.ne.s32.totalorder %s646_s0, %s459_s13  ;;  %p463_p9 = scmp.lt.u32.totalorder %s459_s13, %s646_s0 }
  0x18   :  { %p465_p10 = pnand %p463_p9, %p460_p8 }
  0x1a   :  { %468 = shalt.err (!%p465_p10)
}
  0x1b   :  { %s469_s1 = scalar_lea.vmem %s20_s8, 128  ;;  %p474_p12 = scmp.lt.s32.totalorder %s20_s8, %s20_s8 }
  0x1c   :  { %p470_p11 = scmp.ne.s32.totalorder %s20_s8, %s469_s1  ;;  %p475_p13 = scmp.lt.s32.totalorder %s469_s1, %s469_s1 }
  0x1e   :  { %p476_p0 = por %p475_p13, %p474_p12 }
  0x20   :  { %p477_p1 = pnand %p476_p0, %p470_p11 }
  0x22   :  { %480 = shalt.err (!%p477_p1)
}
  0x23   :  { %22 = dma.hbm_to_vmem [thread:$0]  %s646_s0, 128, %s20_s8, [#allocation3]  }
  0x24   :  { %s481_s22 = scalar_lea.hbm %s649_s3, 2048 }
  0x25   :  { %p482_p2 = scmp.ne.s32.totalorder %s649_s3, %s481_s22  ;;  %p485_p3 = scmp.lt.u32.totalorder %s481_s22, %s649_s3 }
  0x27   :  { %p487_p4 = pnand %p485_p3, %p482_p2 }
  0x29   :  { %490 = shalt.err (!%p487_p4)
}
  0x2a   :  { %s491_s27 = scalar_lea.vmem %s43_s10, 2048  ;;  %p496_p6 = scmp.lt.s32.totalorder %s43_s10, %s43_s10 }
  0x2b   :  { %p492_p5 = scmp.ne.s32.totalorder %s43_s10, %s491_s27  ;;  %p497_p7 = scmp.lt.s32.totalorder %s491_s27, %s491_s27 }
  0x2d   :  { %p498_p8 = por %p497_p7, %p496_p6 }
  0x2f   :  { %p499_p9 = pnand %p498_p8, %p492_p5 }
  0x31   :  { %502 = shalt.err (!%p499_p9)
}
  0x32   :  { %48 = dma.hbm_to_vmem [thread:$0]  %s649_s3, 2048, %s43_s10, [#allocation6], %s532_s28, %s532_s28, %s533_s29  }
  0x33   :  { %525 = dma.done.wait [#allocation3], 128  }
  0x34   :  { %526 = vsyncadd [#allocation3], 4294967168 }
  0x35   :  { %527 = dma.done.wait [#allocation6], 4096  }
  0x36   :  { %528 = vsyncadd [#allocation6], 4294963200  ;;  %v536_v0 = vmov 0.0|0.0   ;;  %vm537_vm0 = vmmov 0   ;;  %v538_v1 = vmov 0.0   ;;  %v61_v2 = vld [vmem:[#allocation5] sm:$0xff] }
  0x37   :  { %376 = vmatprep.subr.bf16.mxu0 %v536_v0  ;;  %338 = vmatprep.mubr.msk.f32.mxu0 %vm537_vm0, %v538_v1  ;;  %v62_v3 = vld [vmem:[#allocation5 + $0x8] sm:$0xff]  ;;  %v63_v4 = vld [vmem:[#allocation5 + $0x10] sm:$0xff]  ;;  %v64_v6 = vld [vmem:[#allocation5 + $0x18] sm:$0xff]  ;;  %s539_s7 = smov [#allocation8]  }
  0x38   :  { %400 = vmatprep.subr.bf16.mxu1 %v536_v0  ;;  %373 = vmatprep.mubr.msk.f32.mxu1 %vm537_vm0, %v538_v1  ;;  %v377_v5 = vpack.c.bf16 %v62_v3, %v61_v2  ;;  %v380_v7 = vpack.c.bf16 %v64_v6, %v63_v4  ;;  %v65_v8 = vld [vmem:[#allocation5 + $0x20] sm:$0xff]  ;;  %v66_v9 = vld [vmem:[#allocation5 + $0x28] sm:$0xff]  ;;  %v157_v12 = vld [vmem:[#allocation7 + $0x10] sm:$0xff] }
  0x39   :  { %v155_v10 = vld [vmem:[#allocation7] sm:$0xff]  ;;  %v156_v11 = vld [vmem:[#allocation7 + $0x8] sm:$0xff]  ;;  %v158_v13 = vld [vmem:[#allocation7 + $0x18] sm:$0xff]  ;;  %v383_v14 = vpack.c.bf16 %v66_v9, %v65_v8 }
  0x3a   :  { %378 = vmatpush3.bf16.msra.mxu0 %v377_v5  ;;  %v401_v15 = vpack.c.bf16 %v156_v11, %v155_v10  ;;  %v67_v16 = vld [vmem:[#allocation5 + $0x30] sm:$0xff]  ;;  %v68_v17 = vld [vmem:[#allocation5 + $0x38] sm:$0xff]  ;;  %v404_v18 = vpack.c.bf16 %v158_v13, %v157_v12  ;;  %v159_v19 = vld [vmem:[#allocation7 + $0x20] sm:$0xff] }
  0x3b   :  { %379 = vmatprep.subr.bf16.mxu0 %v536_v0  ;;  %v160_v20 = vld [vmem:[#allocation7 + $0x28] sm:$0xff]  ;;  %v386_v21 = vpack.c.bf16 %v68_v17, %v67_v16  ;;  %v69_v22 = vld [vmem:[#allocation5 + $0x40] sm:$0xff]  ;;  %v161_v25 = vld [vmem:[#allocation7 + $0x30] sm:$0xff] }
  0x3c   :  { %402 = vmatpush3.bf16.msra.mxu1 %v401_v15  ;;  %v70_v23 = vld [vmem:[#allocation5 + $0x48] sm:$0xff]  ;;  %v407_v24 = vpack.c.bf16 %v160_v20, %v159_v19  ;;  %v162_v26 = vld [vmem:[#allocation7 + $0x38] sm:$0xff]  ;;  %v71_v28 = vld [vmem:[#allocation5 + $0x50] sm:$0xff] }
  0x3d   :  { %403 = vmatprep.subr.bf16.mxu1 %v536_v0  ;;  %v389_v27 = vpack.c.bf16 %v70_v23, %v69_v22  ;;  %v72_v29 = vld [vmem:[#allocation5 + $0x58] sm:$0xff]  ;;  %v410_v30 = vpack.c.bf16 %v162_v26, %v161_v25  ;;  %v163_v31 = vld [vmem:[#allocation7 + $0x40] sm:$0xff]  ;;  %v164_v32 = vld [vmem:[#allocation7 + $0x48] sm:$0xff] }
  0x3e   :  { %381 = vmatpush3.bf16.msra.mxu0 %v380_v7  ;;  %v392_v33 = vpack.c.bf16 %v72_v29, %v71_v28  ;;  %v73_v34 = vld [vmem:[#allocation5 + $0x60] sm:$0xff]  ;;  %v74_v35 = vld [vmem:[#allocation5 + $0x68] sm:$0xff]  ;;  %v413_v36 = vpack.c.bf16 %v164_v32, %v163_v31  ;;  %v165_v37 = vld [vmem:[#allocation7 + $0x50] sm:$0xff] }
  0x3f   :  { %382 = vmatprep.subr.bf16.mxu0 %v536_v0  ;;  %v166_v38 = vld [vmem:[#allocation7 + $0x58] sm:$0xff]  ;;  %v395_v39 = vpack.c.bf16 %v74_v35, %v73_v34  ;;  %v75_v40 = vld [vmem:[#allocation5 + $0x70] sm:$0xff]  ;;  %v167_v43 = vld [vmem:[#allocation7 + $0x60] sm:$0xff] }
  0x40   :  { %405 = vmatpush3.bf16.msra.mxu1 %v404_v18  ;;  %v76_v41 = vld [vmem:[#allocation5 + $0x78] sm:$0xff]  ;;  %v416_v42 = vpack.c.bf16 %v166_v38, %v165_v37  ;;  %v168_v44 = vld [vmem:[#allocation7 + $0x68] sm:$0xff]  ;;  %v169_v48 = vld [vmem:[#allocation7 + $0x70] sm:$0xff] }
  0x41   :  { %406 = vmatprep.subr.bf16.mxu1 %v536_v0  ;;  %v398_v45 = vpack.c.bf16 %v76_v41, %v75_v40  ;;  %v419_v46 = vpack.c.bf16 %v168_v44, %v167_v43  ;;  %v60_v47 = vld [vmem:[#allocation2] sm:$0xff] }
  0x42   :  { %384 = vmatpush3.bf16.msra.mxu0 %v383_v14  ;;  %v170_v49 = vld [vmem:[#allocation7 + $0x78] sm:$0xff] }
  0x43   :  { %385 = vmatprep.subr.bf16.mxu0 %v536_v0  ;;  %v422_v50 = vpack.c.bf16 %v170_v49, %v169_v48  ;;  %v270_v51 = vld [vmem:[%s648_s2] ss:$0 sm:$0xff]  ;;  %s260_s2 = sshll.u32 %s539_s7, 4  ;;  %s261_s2 = int_to_ptr.vmem [resolvable:$true] %s260_s2 }
  0x44   :  { %408 = vmatpush3.bf16.msra.mxu1 %v407_v24  ;;  %v271_v56 = vld [vmem:[%s650_s4] ss:$0 sm:$0xff]  ;;  %s503_s8 = scalar_lea.vmem %s261_s2, 128  ;;  %p508_p11 = scmp.lt.s32.totalorder %s261_s2, %s261_s2 }
  0x45   :  { %409 = vmatprep.subr.bf16.mxu1 %v536_v0  ;;  %p504_p10 = scmp.ne.s32.totalorder %s261_s2, %s503_s8  ;;  %p509_p12 = scmp.lt.s32.totalorder %s503_s8, %s503_s8 }
  0x46   :  { %387 = vmatpush3.bf16.msra.mxu0 %v386_v21 }
  0x47   :  { %388 = vmatprep.subr.bf16.mxu0 %v536_v0  ;;  %p510_p13 = por %p509_p12, %p508_p11 }
  0x48   :  { %411 = vmatpush3.bf16.msra.mxu1 %v410_v30 }
  0x49   :  { %412 = vmatprep.subr.bf16.mxu1 %v536_v0  ;;  %p511_p0 = pnand %p510_p13, %p504_p10 }
  0x4a   :  { %390 = vmatpush3.bf16.msra.mxu0 %v389_v27 }
  0x4b   :  { %391 = vmatprep.subr.bf16.mxu0 %v536_v0 }
  0x4c   :  { %414 = vmatpush3.bf16.msra.mxu1 %v413_v36 }
  0x4d   :  { %415 = vmatprep.subr.bf16.mxu1 %v536_v0 }
  0x4e   :  { %393 = vmatpush3.bf16.msra.mxu0 %v392_v33 }
  0x4f   :  { %394 = vmatprep.subr.bf16.mxu0 %v536_v0 }
  0x50   :  { %417 = vmatpush3.bf16.msra.mxu1 %v416_v42 }
  0x51   :  { %418 = vmatprep.subr.bf16.mxu1 %v536_v0 }
  0x52   :  { %396 = vmatpush3.bf16.msra.mxu0 %v395_v39 }
  0x53   :  { %397 = vmatprep.subr.bf16.mxu0 %v536_v0 }
  0x54   :  { %420 = vmatpush3.bf16.msra.mxu1 %v419_v46 }
  0x55   :  { %421 = vmatprep.subr.bf16.mxu1 %v536_v0 }
  0x56   :  { %399 = vmatpush3.bf16.msra.mxu0 %v398_v45 }
  0x58   :  { %423 = vmatpush3.bf16.msra.mxu1 %v422_v50 }
  0x59   :  { %339 = vmatmul.mubr.f32.vlgmr.msra.gmra.mrb[0].mxu0 %v60_v47 }
 0x12c   :  { %v150_v52 = vpop.f32.mrb[0].mxu0 }
 0x12d   :  { %v151_v53 = vadd.f32 %v270_v51, %v150_v52  ;;  %v340_v54 = vpop.f32.mrb[1].mxu0 }
 0x12f   :  { %v154_v55 = vmax.f32 %v151_v53, 0.0 }
 0x131   :  { %374 = vmatmul.mubr.f32.vlgmr.msra.gmra.mrb[0].mxu1 %v154_v55 }
 0x204   :  { %v244_v57 = vpop.f32.mrb[0].mxu1 }
 0x205   :  { %v245_v58 = vadd.f32 %v271_v56, %v244_v57  ;;  %v375_v59 = vpop.f32.mrb[1].mxu1 }
 0x207   :  { %v248_v60 = vsub.f32 0.0, %v245_v58 }
 0x209   :  { %v249_v61 = vmul.f32 1.442695, %v248_v60 }
 0x20b   :  { %433 = vpow2.f32 %v249_v61 }
 0x215   :  { %v434_v62 = vpop.eup %433 }
 0x216   :  { %v251_v63 = vadd.f32 1.0, %v434_v62 }
 0x218   :  { %435 = vrcp.f32 %v251_v63 }
 0x222   :  { %v436_v0 = vpop.eup %435 }
 0x223   :  { %253 = vst [vmem:[#allocation8] sm:$0xff] %v436_v0 }
 0x224   :  { %514 = shalt.err (!%p511_p0)
}
 0x225   :  { %s515_s10 = scalar_lea.hbm %s651_s5, 128 }
 0x226   :  { %p516_p1 = scmp.ne.s32.totalorder %s651_s5, %s515_s10  ;;  %p519_p2 = scmp.lt.u32.totalorder %s515_s10, %s651_s5 }
 0x228   :  { %p521_p3 = pnand %p519_p2, %p516_p1 }
 0x22a   :  { %524 = shalt.err (!%p521_p3)
}
 0x22b   :  { %263 = dma.vmem_to_hbm [thread:$0]  %s261_s2, 128, %s651_s5, [#allocation4]  }
 0x22c   :  { %529 = dma.done.wait [#allocation4], 128  }
 0x22d   :  { %530 = vsyncadd [#allocation4], 4294967168 }
 0x22e   :  { %267 = vsyncpa [#allocation3], 1 }
 0x22f   :  { %268 = vsyncpa [#allocation6], 1 }
 0x230   :  { %269 = vsyncpa [#allocation4], 1 }

</bundles_post_ra>
